<compile_context>
chip_gen: v7x
topology: tpu7x:2x2x1
jax: 0.10.0
libtpu: 0.0.40
codegen_flags: <defaults>
</compile_context>

<pallas_src>
import math

import jax
import jax.numpy as jnp
from jax.experimental import pallas as pl
from jax.experimental.pallas import tpu as pltpu


# ----------------------------------------------------------------------------- kernel
def ensemble_mlp_kernel(x_ref, w1_ref, b1_ref, w2_ref, b2_ref, w3_ref, b3_ref,
                        o_ref):
    """Whole-ensemble 3-layer MLP on one batch tile.

    x_ref : (tb, d_in)          compute dtype (f32 or bf16)
    w1_ref: (d_in, E*h1)        ensemble fused into the N dim
    w2_ref: (E*h1, E*h2)        block-diagonal per-member weights
    w3_ref: (E*h2, E*d_out)     block-diagonal per-member weights
    b*_ref: (1, E*h*)           f32 biases
    o_ref : (tb, E*d_out)       f32 lane-dense output slab
    """
    x = x_ref[...]

    # Layer 1: one matmul for all ensemble members, bias + ReLU in f32.
    h = jnp.dot(x, w1_ref[...], preferred_element_type=jnp.float32)
    h = jnp.maximum(h + b1_ref[...], 0.0)

    # Layer 2: block-diagonal weights -> one full-width matmul, no lane slicing.
    h = jnp.dot(h.astype(w2_ref.dtype), w2_ref[...],
                preferred_element_type=jnp.float32)
    h = jnp.maximum(h + b2_ref[...], 0.0)

    # Layer 3 (output): one matmul, single lane-dense store of the whole slab.
    o = jnp.dot(h.astype(w3_ref.dtype), w3_ref[...],
                preferred_element_type=jnp.float32)
    o_ref[...] = (o + b3_ref[...]).astype(o_ref.dtype)


# ----------------------------------------------------------------------------- helpers
def _round_up(v, m):
    return ((v + m - 1) // m) * m


def _pick_batch_tile(batch, max_tile=512, align=16):
    """Batch tile: >=2 grid steps when possible, 16-row aligned (f32 & bf16 legal)."""
    if batch <= align:
        return batch                       # full-dim block is always layout-legal
    half = _round_up(pl.cdiv(batch, 2), align)
    return min(max_tile, half)


def _block_diag(w):
    """(E, a, b) -> (E*a, E*b) with per-member weights on the diagonal."""
    E, a, b = w.shape
    out = jnp.zeros((E * a, E * b), dtype=w.dtype)
    for e in range(E):
        out = out.at[e * a:(e + 1) * a, e * b:(e + 1) * b].set(w[e])
    return out


def _vmem_limit_bytes(tb, d_in, E, h1, h2, d_out, cbytes):
    """Rough budget: 2x resident weights + 2x (x/out tiles) + activations, with headroom."""
    w_bytes = (d_in * E * h1 + (E * h1) * (E * h2) + (E * h2) * (E * d_out)) * cbytes
    b_bytes = (E * h1 + E * h2 + E * d_out) * 4
    io_bytes = tb * d_in * cbytes + tb * E * d_out * 4
    act_bytes = tb * (E * h1 + E * h2) * 4
    need = 2 * (w_bytes + b_bytes) + 2 * io_bytes + 2 * act_bytes
    return int(min(max(2 * need, 32 * 2**20), 64 * 2**20))


# ----------------------------------------------------------------------------- forward
def make_ensemble_mlp_forward(params, compute_dtype=jnp.float32):
    """Fuse weights once; return a jitted forward: (B, d_in) -> (E, B, d_out)."""
    (w1, b1), (w2, b2), (w3, b3) = params
    E, d_in, h1 = w1.shape
    _, _, h2 = w2.shape
    _, _, d_out = w3.shape

    # Layer 1: ensemble fused into the matmul N dim -> (d_in, E*h1).
    w1_f = jnp.transpose(w1, (1, 0, 2)).reshape(d_in, E * h1).astype(compute_dtype)
    b1_f = b1.reshape(1, E * h1).astype(jnp.float32)
    # Layers 2/3: block-diagonal so the whole ensemble is one matmul each.
    w2_bd = _block_diag(w2).astype(compute_dtype)
    b2_f = b2.reshape(1, E * h2).astype(jnp.float32)
    w3_bd = _block_diag(w3).astype(compute_dtype)
    b3_f = b3.reshape(1, E * d_out).astype(jnp.float32)

    cbytes = jnp.dtype(compute_dtype).itemsize

    def forward(x):
        B = x.shape[0]
        tb = _pick_batch_tile(B)
        grid = (pl.cdiv(B, tb),)

        out_flat = pl.pallas_call(
            ensemble_mlp_kernel,
            out_shape=jax.ShapeDtypeStruct((B, E * d_out), jnp.float32),
            grid_spec=pltpu.PrefetchScalarGridSpec(
                num_scalar_prefetch=0,
                grid=grid,
                in_specs=[
                    # Batch-tiled activations (ragged last tile handled by Pallas).
                    pl.BlockSpec((tb, d_in), lambda i: (i, 0)),
                    # Weights/biases: constant block index -> DMA'd once, VMEM-resident.
                    # TODO(synk): pipeline_mode=pl.Buffered(1) on these specs would drop
                    # the redundant second weight buffer (matters for v7x's 64 MiB VMEM).
                    pl.BlockSpec((d_in, E * h1), lambda i: (0, 0)),
                    pl.BlockSpec((1, E * h1), lambda i: (0, 0)),
                    pl.BlockSpec((E * h1, E * h2), lambda i: (0, 0)),
                    pl.BlockSpec((1, E * h2), lambda i: (0, 0)),
                    pl.BlockSpec((E * h2, E * d_out), lambda i: (0, 0)),
                    pl.BlockSpec((1, E * d_out), lambda i: (0, 0)),
                ],
                out_specs=pl.BlockSpec((tb, E * d_out), lambda i: (i, 0)),
            ),
            compiler_params=pltpu.CompilerParams(
                dimension_semantics=("parallel",),   # batch tiles -> megacore split
                vmem_limit_bytes=_vmem_limit_bytes(tb, d_in, E, h1, h2, d_out, cbytes),
            ),
        )(x.astype(compute_dtype), w1_f, b1_f, w2_bd, b2_f, w3_bd, b3_f)

        # Lane-dense slab (B, E*d_out) -> (E, B, d_out); wrapper-side plumbing only.
        return jnp.transpose(out_flat.reshape(B, E, d_out), (1, 0, 2))

    return jax.jit(forward)


# ----------------------------------------------------------------------------- params / reference
def init_linear_ensemble(key, in_features, out_features, ensemble_size):
    """Matches LinearEnsemble.reset_parameters: uniform(-std, std), std=1/sqrt(in)."""
    std = 1.0 / math.sqrt(in_features)
    kw, kb = jax.random.split(key)
    w = jax.random.uniform(kw, (ensemble_size, in_features, out_features),
                           minval=-std, maxval=std, dtype=jnp.float32)
    b = jax.random.uniform(kb, (ensemble_size, 1, out_features),
                           minval=-std, maxval=std, dtype=jnp.float32)
    return w, b


def make_ensemble_mlp_params(key, input_dim, output_dim, ensemble_size,
                             hidden_layers):
    dims = [input_dim] + list(hidden_layers) + [output_dim]
    params = []
    for i in range(len(dims) - 1):
        key, sub = jax.random.split(key)
        params.append(
            init_linear_ensemble(sub, dims[i], dims[i + 1], ensemble_size))
    return params


def reference_forward(x, params):
    """Plain-JAX reference mirroring EnsembleMLP.forward (default config)."""
    (w1, b1), (w2, b2), (w3, b3) = params
    E = w1.shape[0]
    h = jnp.repeat(x[None], E, axis=0)          # (E, B, D_in)
    h = jnp.maximum(jnp.einsum('ebi,eio->ebo', h, w1) + b1, 0.0)
    h = jnp.maximum(jnp.einsum('ebi,eio->ebo', h, w2) + b2, 0.0)
    return jnp.einsum('ebi,eio->ebo', h, w3) + b3


# ----------------------------------------------------------------------------- demo / test
if __name__ == "__main__":
    # TODO(synk): dropout / LayerNormEnsemble / output_act are disabled in the
    # default EnsembleMLP config and are not implemented in this kernel.
    batch = 8
    input_dim = 32
    output_dim = 8
    ensemble_size = 3
    hidden_layers = [32, 32]

    key = jax.random.PRNGKey(0)
    k_params, k_x1, k_x2 = jax.random.split(key, 3)

    params = make_ensemble_mlp_params(k_params, input_dim, output_dim,
                                      ensemble_size, hidden_layers)

    # f32 path: exact-tolerance check at small batch (single grid step).
    fwd = make_ensemble_mlp_forward(params, compute_dtype=jnp.float32)
    x = jax.random.normal(k_x1, (batch, input_dim), dtype=jnp.float32)
    out = jax.block_until_ready(fwd(x))
    ref = reference_forward(x, params)
    assert out.shape == (ensemble_size, batch, output_dim), out.shape
    assert jnp.allclose(out, ref, atol=1e-5, rtol=1e-5), \
        float(jnp.max(jnp.abs(out - ref)))

    # Awkward larger batch: exercises cdiv tiling, >=2 grid steps, ragged last tile.
    x2 = jax.random.normal(k_x2, (200, input_dim), dtype=jnp.float32)
    out2 = jax.block_until_ready(fwd(x2))
    ref2 = reference_forward(x2, params)
    assert out2.shape == (ensemble_size, 200, output_dim), out2.shape
    assert jnp.allclose(out2, ref2, atol=1e-5, rtol=1e-5), \
        float(jnp.max(jnp.abs(out2 - ref2)))

    # bf16 compute path (f32 accumulate, bias/ReLU in f32) — loose tolerance.
    fwd_bf16 = make_ensemble_mlp_forward(params, compute_dtype=jnp.bfloat16)
    out3 = jax.block_until_ready(fwd_bf16(x2))
    assert jnp.allclose(out3, ref2, atol=1.5e-1, rtol=5e-2), \
        float(jnp.max(jnp.abs(out3 - ref2)))

    print("KERNEL_OK")
</pallas_src>

<mosaic_0001>
module attributes {stable_mosaic.version = 11 : i64} {
  func.func @ensemble_mlp_kernel(%arg0: i32, %arg1: memref<8x32xf32, #tpu.memory_space<vmem>>, %arg2: memref<32x96xf32, #tpu.memory_space<vmem>>, %arg3: memref<1x96xf32, #tpu.memory_space<vmem>>, %arg4: memref<96x96xf32, #tpu.memory_space<vmem>>, %arg5: memref<1x96xf32, #tpu.memory_space<vmem>>, %arg6: memref<96x24xf32, #tpu.memory_space<vmem>>, %arg7: memref<1x24xf32, #tpu.memory_space<vmem>>, %arg8: memref<8x24xf32, #tpu.memory_space<vmem>>) attributes {dimension_semantics = [#tpu.dimension_semantics<parallel>], iteration_bounds = array<i64: 1>, scalar_prefetch = 0 : i64, scratch_operands = 0 : i64, tpu.core_type = #tpu.core_type<tc>, window_params = [{transform_indices = @transform_0, window_bounds = array<i64: 8, 32>}, {pipeline_mode = #tpu.pipeline_mode<synchronous>, transform_indices = @transform_1, window_bounds = array<i64: 32, 96>}, {pipeline_mode = #tpu.pipeline_mode<synchronous>, transform_indices = @transform_2, window_bounds = array<i64: 1, 96>}, {pipeline_mode = #tpu.pipeline_mode<synchronous>, transform_indices = @transform_3, window_bounds = array<i64: 96, 96>}, {pipeline_mode = #tpu.pipeline_mode<synchronous>, transform_indices = @transform_4, window_bounds = array<i64: 1, 96>}, {pipeline_mode = #tpu.pipeline_mode<synchronous>, transform_indices = @transform_5, window_bounds = array<i64: 96, 24>}, {pipeline_mode = #tpu.pipeline_mode<synchronous>, transform_indices = @transform_6, window_bounds = array<i64: 1, 24>}, {transform_indices = @transform_7, window_bounds = array<i64: 8, 24>}]} {
    %c0 = arith.constant 0 : index
    %c0_0 = arith.constant 0 : index
    %0 = vector.load %arg1[%c0, %c0_0] : memref<8x32xf32, #tpu.memory_space<vmem>>, vector<8x32xf32>
    %c0_1 = arith.constant 0 : index
    %c0_2 = arith.constant 0 : index
    %1 = vector.load %arg2[%c0_1, %c0_2] : memref<32x96xf32, #tpu.memory_space<vmem>>, vector<32x96xf32>
    %cst = arith.constant dense<0.000000e+00> : vector<8x96xf32>
    %2 = tpu.matmul %0, %1, %cst {dimension_numbers = #tpu.dot_dimension_numbers<[1], [0], [0], [1], [0, 0, 1, 1], [], []>} : vector<8x32xf32>, vector<32x96xf32>, vector<8x96xf32> -> vector<8x96xf32>
    %c0_3 = arith.constant 0 : index
    %c0_4 = arith.constant 0 : index
    %3 = vector.load %arg3[%c0_3, %c0_4] : memref<1x96xf32, #tpu.memory_space<vmem>>, vector<1x96xf32>
    %4 = vector.broadcast %3 : vector<1x96xf32> to vector<8x96xf32>
    %5 = arith.addf %2, %4 : vector<8x96xf32>
    %cst_5 = arith.constant 0.000000e+00 : f32
    %6 = vector.broadcast %cst_5 : f32 to vector<8x96xf32>
    %7 = arith.maximumf %5, %6 : vector<8x96xf32>
    %c0_6 = arith.constant 0 : index
    %c0_7 = arith.constant 0 : index
    %8 = vector.load %arg4[%c0_6, %c0_7] : memref<96x96xf32, #tpu.memory_space<vmem>>, vector<96x96xf32>
    %cst_8 = arith.constant dense<0.000000e+00> : vector<8x96xf32>
    %9 = tpu.matmul %7, %8, %cst_8 {dimension_numbers = #tpu.dot_dimension_numbers<[1], [0], [0], [1], [0, 0, 1, 1], [], []>} : vector<8x96xf32>, vector<96x96xf32>, vector<8x96xf32> -> vector<8x96xf32>
    %c0_9 = arith.constant 0 : index
    %c0_10 = arith.constant 0 : index
    %10 = vector.load %arg5[%c0_9, %c0_10] : memref<1x96xf32, #tpu.memory_space<vmem>>, vector<1x96xf32>
    %11 = vector.broadcast %10 : vector<1x96xf32> to vector<8x96xf32>
    %12 = arith.addf %9, %11 : vector<8x96xf32>
    %cst_11 = arith.constant 0.000000e+00 : f32
    %13 = vector.broadcast %cst_11 : f32 to vector<8x96xf32>
    %14 = arith.maximumf %12, %13 : vector<8x96xf32>
    %c0_12 = arith.constant 0 : index
    %c0_13 = arith.constant 0 : index
    %15 = vector.load %arg6[%c0_12, %c0_13] : memref<96x24xf32, #tpu.memory_space<vmem>>, vector<96x24xf32>
    %cst_14 = arith.constant dense<0.000000e+00> : vector<8x24xf32>
    %16 = tpu.matmul %14, %15, %cst_14 {dimension_numbers = #tpu.dot_dimension_numbers<[1], [0], [0], [1], [0, 0, 1, 1], [], []>} : vector<8x96xf32>, vector<96x24xf32>, vector<8x24xf32> -> vector<8x24xf32>
    %c0_15 = arith.constant 0 : index
    %c0_16 = arith.constant 0 : index
    %17 = vector.load %arg7[%c0_15, %c0_16] : memref<1x24xf32, #tpu.memory_space<vmem>>, vector<1x24xf32>
    %18 = vector.broadcast %17 : vector<1x24xf32> to vector<8x24xf32>
    %19 = arith.addf %16, %18 : vector<8x24xf32>
    %c0_17 = arith.constant 0 : index
    %c0_18 = arith.constant 0 : index
    %20 = vector.load %arg8[%c0_17, %c0_18] : memref<8x24xf32, #tpu.memory_space<vmem>>, vector<8x24xf32>
    tpu.vector_store %arg8[%c0_17, %c0_18], %19 {strides = array<i32>} : memref<8x24xf32, #tpu.memory_space<vmem>>, vector<8x24xf32>,
    return
  }
  func.func @transform_0(%arg0: i32) -> (i32, i32) {
    %c0_i32 = arith.constant 0 : i32
    %c0_i32_0 = arith.constant 0 : i32
    return %arg0, %c0_i32 : i32, i32
  }
  func.func @transform_1(%arg0: i32) -> (i32, i32) {
    %c0_i32 = arith.constant 0 : i32
    %c0_i32_0 = arith.constant 0 : i32
    %c0_i32_1 = arith.constant 0 : i32
    return %c0_i32, %c0_i32_0 : i32, i32
  }
  func.func @transform_2(%arg0: i32) -> (i32, i32) {
    %c0_i32 = arith.constant 0 : i32
    %c0_i32_0 = arith.constant 0 : i32
    %c0_i32_1 = arith.constant 0 : i32
    return %c0_i32, %c0_i32_0 : i32, i32
  }
  func.func @transform_3(%arg0: i32) -> (i32, i32) {
    %c0_i32 = arith.constant 0 : i32
    %c0_i32_0 = arith.constant 0 : i32
    %c0_i32_1 = arith.constant 0 : i32
    return %c0_i32, %c0_i32_0 : i32, i32
  }
  func.func @transform_4(%arg0: i32) -> (i32, i32) {
    %c0_i32 = arith.constant 0 : i32
    %c0_i32_0 = arith.constant 0 : i32
    %c0_i32_1 = arith.constant 0 : i32
    return %c0_i32, %c0_i32_0 : i32, i32
  }
  func.func @transform_5(%arg0: i32) -> (i32, i32) {
    %c0_i32 = arith.constant 0 : i32
    %c0_i32_0 = arith.constant 0 : i32
    %c0_i32_1 = arith.constant 0 : i32
    return %c0_i32, %c0_i32_0 : i32, i32
  }
  func.func @transform_6(%arg0: i32) -> (i32, i32) {
    %c0_i32 = arith.constant 0 : i32
    %c0_i32_0 = arith.constant 0 : i32
    %c0_i32_1 = arith.constant 0 : i32
    return %c0_i32, %c0_i32_0 : i32, i32
  }
  func.func @transform_7(%arg0: i32) -> (i32, i32) {
    %c0_i32 = arith.constant 0 : i32
    %c0_i32_0 = arith.constant 0 : i32
    return %arg0, %c0_i32 : i32, i32
  }
}

</mosaic_0001>

<bundles_post_ra>
// kernel: forward.1
= control target key start
LH: loop header
LB: loop body
LE: loop exit
PB: predicated region body
PF: predicated region fallthrough
CT: control target
= control target key end

     0   :  { %12 = vsyncpa [#allocation3], 0  ;;  %s743_s0 = inlined_call_operand.hbm [shape: f32[8,32], index: 0, kind: input, shape index: {}]   ;;  %s744_s1 = inlined_call_operand.hbm [shape: f32[32,96], index: 1, kind: input, shape index: {}]   ;;  %s745_s2 = inlined_call_operand.vmem [shape: f32[1,96], index: 2, kind: input, shape index: {}]   ;;  %s746_s3 = inlined_call_operand.hbm [shape: f32[96,96], index: 3, kind: input, shape index: {}]   ;;  %s747_s4 = inlined_call_operand.vmem [shape: f32[1,96], index: 4, kind: input, shape index: {}]   ;;  %s748_s5 = inlined_call_operand.hbm [shape: f32[96,24], index: 5, kind: input, shape index: {}]   ;;  %s749_s6 = inlined_call_operand.vmem [shape: f32[1,24], index: 6, kind: input, shape index: {}]   ;;  %s750_s7 = inlined_call_operand.vmem [shape: f32[8,24], index: 7, kind: output, shape index: {}]  }
   0x1   :  { %13 = vsyncpa [#allocation5], 0 }
   0x2   :  { %14 = vsyncpa [#allocation8], 0  ;;  %s608_s24 = smov [#allocation4]   ;;  %s514_s28 = scalar_lea.hbm %s744_s1, 512 }
   0x3   :  { %s30_s25 = sshll.u32 %s608_s24, 4  ;;  %p515_p0 = scmp.ne.s32.totalorder %s744_s1, %s514_s28  ;;  %s31_s25 = int_to_ptr.vmem [resolvable:$true] %s30_s25 }
   0x4   :  { %p518_p1 = scmp.lt.u32.totalorder %s514_s28, %s744_s1 }
   0x6   :  { %p520_p2 = pnand %p518_p1, %p515_p0 }
   0x8   :  { %523 = shalt.err (!%p520_p2)
}
   0x9   :  { %s524_s10 = scalar_lea.vmem %s31_s25, 512  ;;  %p529_p4 = scmp.lt.s32.totalorder %s31_s25, %s31_s25 }
   0xa   :  { %p525_p3 = scmp.ne.s32.totalorder %s31_s25, %s524_s10  ;;  %p530_p5 = scmp.lt.s32.totalorder %s524_s10, %s524_s10 }
   0xc   :  { %p531_p6 = por %p530_p5, %p529_p4 }
   0xe   :  { %p532_p7 = pnand %p531_p6, %p525_p3 }
  0x10   :  { %535 = shalt.err (!%p532_p7)
}
  0x11   :  { %s609_s11 = smov 128   ;;  %s610_s12 = smov 8  }
  0x12   :  { %36 = dma.hbm_to_vmem [thread:$0]  %s744_s1, 512, %s31_s25, [#allocation5], %s609_s11, %s609_s11, %s610_s12  }
  0x13   :  { %s611_s15 = smov [#allocation2]   ;;  %s612_s17 = smov [#allocation6]  }
  0x14   :  { %s21_s16 = sshll.u32 %s611_s15, 4  ;;  %s44_s18 = sshll.u32 %s612_s17, 4  ;;  %s22_s16 = int_to_ptr.vmem [resolvable:$true] %s21_s16  ;;  %s45_s18 = int_to_ptr.vmem [resolvable:$true] %s44_s18 }
  0x15   :  { %s536_s21 = scalar_lea.hbm %s743_s0, 128 }
  0x16   :  { %p537_p8 = scmp.ne.s32.totalorder %s743_s0, %s536_s21  ;;  %p540_p9 = scmp.lt.u32.totalorder %s536_s21, %s743_s0 }
  0x18   :  { %p542_p10 = pnand %p540_p9, %p537_p8 }
  0x1a   :  { %545 = shalt.err (!%p542_p10)
}
  0x1b   :  { %s546_s1 = scalar_lea.vmem %s22_s16, 128  ;;  %p551_p12 = scmp.lt.s32.totalorder %s22_s16, %s22_s16 }
  0x1c   :  { %p547_p11 = scmp.ne.s32.totalorder %s22_s16, %s546_s1  ;;  %p552_p13 = scmp.lt.s32.totalorder %s546_s1, %s546_s1 }
  0x1e   :  { %p553_p0 = por %p552_p13, %p551_p12 }
  0x20   :  { %p554_p1 = pnand %p553_p0, %p547_p11 }
  0x22   :  { %557 = shalt.err (!%p554_p1)
}
  0x23   :  { %24 = dma.hbm_to_vmem [thread:$0]  %s743_s0, 128, %s22_s16, [#allocation3]  }
  0x24   :  { %s558_s30 = scalar_lea.hbm %s746_s3, 1536 }
  0x25   :  { %p559_p2 = scmp.ne.s32.totalorder %s746_s3, %s558_s30  ;;  %p562_p3 = scmp.lt.u32.totalorder %s558_s30, %s746_s3 }
  0x27   :  { %p564_p4 = pnand %p562_p3, %p559_p2 }
  0x29   :  { %567 = shalt.err (!%p564_p4)
}
  0x2a   :  { %s568_s14 = scalar_lea.vmem %s45_s18, 1536  ;;  %p573_p6 = scmp.lt.s32.totalorder %s45_s18, %s45_s18 }
  0x2b   :  { %p569_p5 = scmp.ne.s32.totalorder %s45_s18, %s568_s14  ;;  %p574_p7 = scmp.lt.s32.totalorder %s568_s14, %s568_s14 }
  0x2d   :  { %p575_p8 = por %p574_p7, %p573_p6 }
  0x2f   :  { %p576_p9 = pnand %p575_p8, %p569_p5 }
  0x31   :  { %579 = shalt.err (!%p576_p9)
}
  0x32   :  { %50 = dma.hbm_to_vmem [thread:$0]  %s746_s3, 1536, %s45_s18, [#allocation5], %s609_s11, %s609_s11, %s610_s12  }
  0x33   :  { %s613_s16 = smov [#allocation7]   ;;  %s580_s21 = scalar_lea.hbm %s748_s5, 1536 }
  0x34   :  { %s58_s17 = sshll.u32 %s613_s16, 4  ;;  %p581_p10 = scmp.ne.s32.totalorder %s748_s5, %s580_s21  ;;  %s59_s17 = int_to_ptr.vmem [resolvable:$true] %s58_s17 }
  0x35   :  { %p584_p11 = scmp.lt.u32.totalorder %s580_s21, %s748_s5 }
  0x37   :  { %p586_p12 = pnand %p584_p11, %p581_p10 }
  0x39   :  { %589 = shalt.err (!%p586_p12)
}
  0x3a   :  { %s590_s1 = scalar_lea.vmem %s59_s17, 1536  ;;  %p595_p0 = scmp.lt.s32.totalorder %s59_s17, %s59_s17 }
  0x3b   :  { %p591_p13 = scmp.ne.s32.totalorder %s59_s17, %s590_s1  ;;  %p596_p1 = scmp.lt.s32.totalorder %s590_s1, %s590_s1 }
  0x3d   :  { %p597_p2 = por %p596_p1, %p595_p0 }
  0x3f   :  { %p598_p3 = pnand %p597_p2, %p591_p13 }
  0x41   :  { %601 = shalt.err (!%p598_p3)
}
  0x42   :  { %64 = dma.hbm_to_vmem [thread:$0]  %s748_s5, 1536, %s59_s17, [#allocation8], %s609_s11, %s609_s11, %s610_s12  }
  0x43   :  { %602 = dma.done.wait [#allocation3], 128  }
  0x44   :  { %603 = vsyncadd [#allocation3], 4294967168 }
  0x45   :  { %604 = dma.done.wait [#allocation5], 2048  }
  0x46   :  { %605 = vsyncadd [#allocation5], 4294965248 }
  0x47   :  { %606 = dma.done.wait [#allocation8], 1536  }
  0x48   :  { %607 = vsyncadd [#allocation8], 4294965760  ;;  %v614_v0 = vmov 0.0|0.0   ;;  %vm615_vm0 = vmmov 0   ;;  %v616_v1 = vmov 0.0   ;;  %v80_v2 = vld [vmem:[#allocation4] sm:$0xff] }
  0x49   :  { %463 = vmatprep.subr.bf16.mxu0 %v614_v0  ;;  %406 = vmatprep.mubr.msk.f32.mxu0 %vm615_vm0, %v616_v1  ;;  %v81_v3 = vld [vmem:[#allocation4 + $0x8] sm:$0xff]  ;;  %v82_v4 = vld [vmem:[#allocation4 + $0x10] sm:$0xff]  ;;  %v83_v6 = vld [vmem:[#allocation4 + $0x18] sm:$0xff]  ;;  %vm91_vm1 = vcmask 261120   ;;  %vm185_vm2 = vcmask 785408   ;;  %vm352_vm3 = vcmask 195584  }
  0x4a   :  { %469 = vmatprep.subr.bf16.mxu1 %v614_v0  ;;  %433 = vmatprep.mubr.msk.f32.mxu1 %vm615_vm0, %v616_v1  ;;  %v464_v5 = vpack.c.bf16 %v81_v3, %v80_v2  ;;  %v166_v7 = vld [vmem:[#allocation6] sm:$0xff]  ;;  %v167_v8 = vld [vmem:[#allocation6 + $0x8] sm:$0xff]  ;;  %v168_v9 = vld [vmem:[#allocation6 + $0x10] sm:$0xff]  ;;  %v467_v11 = vpack.c.bf16 %v83_v6, %v82_v4 }
  0x4b   :  { %v169_v10 = vld [vmem:[#allocation6 + $0x18] sm:$0xff]  ;;  %v470_v12 = vpack.c.bf16 %v167_v8, %v166_v7  ;;  %v170_v14 = vld [vmem:[#allocation6 + $0x20] sm:$0xff]  ;;  %v171_v15 = vld [vmem:[#allocation6 + $0x28] sm:$0xff] }
  0x4c   :  { %465 = vmatpush3.bf16.msra.mxu0 %v464_v5  ;;  %v473_v13 = vpack.c.bf16 %v169_v10, %v168_v9  ;;  %v79_v16 = vld [vmem:[#allocation2] sm:$0xff]  ;;  %v476_v17 = vpack.c.bf16 %v171_v15, %v170_v14  ;;  %v172_v18 = vld [vmem:[#allocation6 + $0x30] sm:$0xff]  ;;  %v174_v21 = vld [vmem:[#allocation6 + $0x40] sm:$0xff] }
  0x4d   :  { %466 = vmatprep.subr.bf16.mxu0 %v614_v0  ;;  %471 = vmatpush3.bf16.msra.mxu1 %v470_v12  ;;  %v173_v19 = vld [vmem:[#allocation6 + $0x38] sm:$0xff]  ;;  %v175_v22 = vld [vmem:[#allocation6 + $0x48] sm:$0xff]  ;;  %v176_v24 = vld [vmem:[#allocation6 + $0x50] sm:$0xff] }
  0x4e   :  { %472 = vmatprep.subr.bf16.mxu1 %v614_v0  ;;  %v479_v20 = vpack.c.bf16 %v173_v19, %v172_v18  ;;  %v482_v23 = vpack.c.bf16 %v175_v22, %v174_v21  ;;  %v177_v25 = vld [vmem:[#allocation6 + $0x58] sm:$0xff]  ;;  %v260_v27 = vld [vmem:[#allocation7] sm:$0xff]  ;;  %v261_v28 = vld [vmem:[#allocation7 + $0x8] sm:$0xff] }
  0x4f   :  { %v485_v26 = vpack.c.bf16 %v177_v25, %v176_v24  ;;  %v262_v29 = vld [vmem:[#allocation7 + $0x10] sm:$0xff]  ;;  %v488_v30 = vpack.c.bf16 %v261_v28, %v260_v27  ;;  %v263_v31 = vld [vmem:[#allocation7 + $0x18] sm:$0xff]  ;;  %v264_v33 = vld [vmem:[#allocation7 + $0x20] sm:$0xff] }
  0x50   :  { %468 = vmatpush3.bf16.msra.mxu0 %v467_v11  ;;  %v491_v32 = vpack.c.bf16 %v263_v31, %v262_v29  ;;  %v265_v34 = vld [vmem:[#allocation7 + $0x28] sm:$0xff]  ;;  %v266_v36 = vld [vmem:[#allocation7 + $0x30] sm:$0xff]  ;;  %v267_v37 = vld [vmem:[#allocation7 + $0x38] sm:$0xff] }
  0x51   :  { %487 = vmatprep.subr.bf16.mxu0 %v614_v0  ;;  %474 = vmatpush3.bf16.msra.mxu1 %v473_v13  ;;  %v494_v35 = vpack.c.bf16 %v265_v34, %v264_v33  ;;  %v497_v38 = vpack.c.bf16 %v267_v37, %v266_v36  ;;  %v268_v39 = vld [vmem:[#allocation7 + $0x40] sm:$0xff]  ;;  %v269_v40 = vld [vmem:[#allocation7 + $0x48] sm:$0xff]  ;;  %v361_v42 = vld [vmem:[%s745_s2] ss:$0 sm:$0xff] }
  0x52   :  { %475 = vmatprep.subr.bf16.mxu1 %v614_v0  ;;  %v500_v41 = vpack.c.bf16 %v269_v40, %v268_v39  ;;  %v270_v47 = vld [vmem:[#allocation7 + $0x50] sm:$0xff]  ;;  %v271_v48 = vld [vmem:[#allocation7 + $0x58] sm:$0xff] }
  0x53   :  { %407 = vmatmul.mubr.msk.f32.vlgmr.msra.gmra.mrb[0].mxu0 %vm91_vm1, %v79_v16  ;;  %v503_v49 = vpack.c.bf16 %v271_v48, %v270_v47  ;;  %v363_v50 = vld [vmem:[%s747_s4] ss:$0 sm:$0xff] }
  0x54   :  { %460 = vmatprep.mubr.msk.f32.mxu0 %vm615_vm0, %v616_v1  ;;  %489 = vmatpush3.bf16.msra.mxu0 %v488_v30  ;;  %v365_v55 = vld [vmem:[%s749_s6] ss:$0 sm:$0xff] }
  0x55   :  { %477 = vmatpush3.bf16.msra.mxu1 %v476_v17  ;;  %490 = vmatprep.subr.bf16.mxu0 %v614_v0 }
  0x56   :  { %478 = vmatprep.subr.bf16.mxu1 %v614_v0 }
  0x58   :  { %492 = vmatpush3.bf16.msra.mxu0 %v491_v32 }
  0x59   :  { %480 = vmatpush3.bf16.msra.mxu1 %v479_v20  ;;  %493 = vmatprep.subr.bf16.mxu0 %v614_v0 }
  0x5a   :  { %481 = vmatprep.subr.bf16.mxu1 %v614_v0 }
  0x5c   :  { %495 = vmatpush3.bf16.msra.mxu0 %v494_v35 }
  0x5d   :  { %483 = vmatpush3.bf16.msra.mxu1 %v482_v23  ;;  %496 = vmatprep.subr.bf16.mxu0 %v614_v0 }
  0x5e   :  { %484 = vmatprep.subr.bf16.mxu1 %v614_v0 }
  0x60   :  { %498 = vmatpush3.bf16.msra.mxu0 %v497_v38 }
  0x61   :  { %486 = vmatpush3.bf16.msra.mxu1 %v485_v26  ;;  %499 = vmatprep.subr.bf16.mxu0 %v614_v0 }
  0x64   :  { %501 = vmatpush3.bf16.msra.mxu0 %v500_v41 }
  0x65   :  { %502 = vmatprep.subr.bf16.mxu0 %v614_v0 }
  0x68   :  { %504 = vmatpush3.bf16.msra.mxu0 %v503_v49 }
 0x126   :  { %v161_v43 = vpop.f32.mrb[0].mxu0 }
 0x127   :  { %v162_v44 = vadd.f32 %v361_v42, %v161_v43  ;;  %v408_v45 = vpop.f32.mrb[1].mxu0 }
 0x129   :  { %v165_v46 = vmax.f32 %v162_v44, 0.0 }
 0x12b   :  { %434 = vmatmul.mubr.msk.f32.vlgmr.msra.gmra.mrb[0].mxu1 %vm185_vm2, %v165_v46 }
 0x1fe   :  { %v255_v51 = vpop.f32.mrb[0].mxu1 }
 0x1ff   :  { %v256_v52 = vadd.f32 %v363_v50, %v255_v51  ;;  %v435_v53 = vpop.f32.mrb[1].mxu1 }
 0x201   :  { %v259_v54 = vmax.f32 %v256_v52, 0.0 }
 0x203   :  { %461 = vmatmul.mubr.msk.f32.vlgmr.msra.gmra.mrb[2].mxu0 %vm185_vm2, %v259_v54 }
 0x2d6   :  { %v348_v56 = vpop.f32.mrb[2].mxu0 }
 0x2d7   :  { %v349_v57 = vadd.f32 %v365_v55, %v348_v56  ;;  %v462_v58 = vpop.f32.mrb[3].mxu0 }
 0x2d9   :  { %353 = vst.msk [vmem:[%s750_s7] sm:$0xff] %vm352_vm3, %v349_v57 }
 0x2da   :  { %358 = vsyncpa [#allocation3], 1 }
 0x2db   :  { %359 = vsyncpa [#allocation5], 1 }
 0x2dc   :  { %360 = vsyncpa [#allocation8], 1 }

</bundles_post_ra>
